<compile_context>
chip_gen: v7x
topology: tpu7x:2x2x1
jax: 0.10.0
libtpu: 0.0.40
codegen_flags: <defaults>
</compile_context>

<pallas_src>
import functools
import math
import re

import jax
import jax.numpy as jnp
from jax import lax
from jax.experimental import pallas as pl
from jax.experimental.pallas import tpu as pltpu


_MAX_TILES_PER_CALL = 32  # bound on the static in-kernel unroll


def _round_up(x: int, m: int) -> int:
    return ((x + m - 1) // m) * m


def _cdiv(a: int, b: int) -> int:
    return -(-a // b)


def _tpu_gen() -> int:
    """Best-effort TPU generation from device_kind (defaults to 6)."""
    try:
        kind = jax.devices()[0].device_kind
    except Exception:
        return 6
    m = re.search(r"(\d+)", kind)
    return int(m.group(1)) if m else 6


def fic_init_weight(window_size: int) -> jnp.ndarray:
    """Deterministic Fourier weight init, identical to FIC.init(). Shape (2k, W)."""
    k = window_size // 2
    j = jnp.arange(window_size, dtype=jnp.float32)
    basis = 2.0 * math.pi * j / window_size                        # (W,)
    i = jnp.arange(2 * k, dtype=jnp.float32)
    f = jnp.floor(i / 2.0) + 1.0                                   # (2k,)
    cos_part = jnp.cos(f[:, None] * basis[None, :])
    sin_part = jnp.sin(-f[:, None] * basis[None, :])
    even = (jnp.arange(2 * k) % 2 == 0)[:, None]
    return jnp.where(even, cos_part, sin_part).astype(jnp.float32)


def _build_toeplitz(weight: jnp.ndarray, stride: int, t_out: int,
                    kw_pad: int) -> jnp.ndarray:
    """G[j, o*t_out + t] = weight[o, j - t*stride] if 0 <= j - t*stride < W else 0."""
    out_c, w = weight.shape
    j = jnp.arange(kw_pad)[:, None, None]          # (kw_pad, 1, 1)
    o = jnp.arange(out_c)[None, :, None]           # (1, out_c, 1)
    t = jnp.arange(t_out)[None, None, :]           # (1, 1, t_out)
    rel = j - t * stride                           # (kw_pad, 1, t_out)
    valid = (rel >= 0) & (rel < w)
    g = jnp.where(valid, weight[o, jnp.clip(rel, 0, w - 1)], 0.0)  # (kw_pad, out_c, t_out)
    return g.reshape(kw_pad, out_c * t_out)


def _fic_kernel(x_ref, g_ref, o_ref, *, t_out, stride, n_tt, kw_pad):
    """x_ref: (TILE_N, W_IN_PAD) bf16; g_ref: (kw_pad, lane) bf16;
       o_ref: (TILE_N, n_tt*lane); lane = out_c_pad*t_out (multiple of 128)."""
    g = g_ref[...]
    lane = g_ref.shape[1]
    step = t_out * stride
    # Bounded static unroll (n_tt <= _MAX_TILES_PER_CALL by construction):
    # each time tile is one MXU matmul written straight into its lane-dense
    # output slice (static, aligned slices only -> clean vld/vst codegen).
    for j in range(n_tt):
        start = j * step
        win = x_ref[:, start:start + kw_pad]                       # (TILE_N, kw_pad)
        o_ref[:, j * lane:(j + 1) * lane] = jnp.dot(
            win, g, preferred_element_type=jnp.float32).astype(o_ref.dtype)


def fic_forward(x: jnp.ndarray, weight: jnp.ndarray, window_size: int,
                stride: int, *, out_dtype=jnp.bfloat16,
                compute_dtype=jnp.bfloat16,
                max_tiles_per_chunk=None) -> jnp.ndarray:
    """x: (B, C, L) -> (B, C, 2*(W//2), L_out), matching FIC.forward."""
    B, C, L = x.shape
    out_c, w_k = weight.shape
    assert w_k == window_size
    l_out = (L - window_size) // stride + 1
    assert l_out >= 1
    n = B * C

    # ---------------- generation-aware knobs ----------------
    gen = _tpu_gen()
    lane_target = 256 if gen >= 6 else 128      # v6e/v7x MXU is 2x256 wide
    kw_cap = 256 if gen >= 6 else 128           # single K-pass per matmul
    if gen >= 7:                                # v7x: 64 MiB physical VMEM
        block_budget = 12 << 20
        vmem_limit = 56 << 20
    else:                                       # v5e/v6e: 128 MiB physical VMEM
        block_budget = 28 << 20
        vmem_limit = 96 << 20

    # ------- channel padding + time-tile (t_out) selection, lane-dense -------
    out_c_pad = _round_up(out_c, 8)
    t_out = 1
    while (out_c_pad * t_out) % 128 != 0:       # smallest t_out: lane % 128 == 0
        t_out *= 2
    # grow toward the generation lane target while kw stays a single K pass
    while (out_c_pad * t_out < lane_target and
           (2 * t_out - 1) * stride + window_size <= kw_cap):
        t_out *= 2
    # shrink if kw blew past the cap and lane can stay a multiple of 128
    while (t_out > 1 and (t_out - 1) * stride + window_size > kw_cap and
           (out_c_pad * (t_out // 2)) % 128 == 0):
        t_out //= 2
    lane = out_c_pad * t_out                    # always a multiple of 128
    step = t_out * stride
    kw = (t_out - 1) * stride + window_size
    kw_pad = _round_up(kw, 128)                 # full-lane contraction dim

    n_tt = _cdiv(l_out, t_out)                  # total time tiles

    # ------- wrapper-level time chunking (keeps tile_n large for long L) -----
    x_bytes = jnp.dtype(compute_dtype).itemsize
    o_bytes = jnp.dtype(out_dtype).itemsize
    bytes_per_tt = step * x_bytes + lane * o_bytes
    target_row_bytes = max(block_budget // 256, bytes_per_tt + kw_pad * x_bytes)
    tt_cap = max(1, (target_row_bytes - kw_pad * x_bytes) // bytes_per_tt)
    tt_cap = min(tt_cap, _MAX_TILES_PER_CALL)
    if max_tiles_per_chunk is not None:
        tt_cap = min(tt_cap, max_tiles_per_chunk)
    tt_per_chunk = min(n_tt, max(1, tt_cap))
    n_chunks = _cdiv(n_tt, tt_per_chunk)
    tt_per_chunk = _cdiv(n_tt, n_chunks)        # rebalance chunk sizes
    n_chunks = _cdiv(n_tt, tt_per_chunk)

    chunk_step = tt_per_chunk * step
    w_in = (tt_per_chunk - 1) * step + kw_pad   # input window per chunk
    w_in_pad = _round_up(w_in, 128)

    # ------------- N tiling against the generation VMEM budget ---------------
    n_rows = n * n_chunks
    row_bytes = w_in_pad * x_bytes + tt_per_chunk * lane * o_bytes
    tile_n = block_budget // max(row_bytes, 1)
    tile_n = max(16, min(1024, (tile_n // 16) * 16))
    tile_n = min(tile_n, _round_up(n_rows, 16))
    if gen >= 7 and n_rows >= 32:
        # guarantee >= 2 grid steps so both v7x TensorCores get work
        tile_n = min(tile_n, _round_up(_cdiv(n_rows, 2), 16))
    n_rows_pad = _round_up(n_rows, tile_n)

    # --- build inputs (one fused XLA pass: cast -> pad -> overlapped chunks) ---
    x2d = x.reshape(n, L).astype(compute_dtype)
    pad_w = max(L, (n_chunks - 1) * chunk_step + w_in_pad)
    x2d = jnp.pad(x2d, ((0, 0), (0, pad_w - L)))
    if n_chunks == 1:
        xc = x2d[:, :w_in_pad]
    else:
        xc = jnp.stack(
            [x2d[:, c * chunk_step: c * chunk_step + w_in_pad]
             for c in range(n_chunks)], axis=1)
        xc = xc.reshape(n_rows, w_in_pad)
    xc = jnp.pad(xc, ((0, n_rows_pad - n_rows), (0, 0)))

    w_pad = jnp.pad(weight.astype(jnp.float32),
                    ((0, out_c_pad - out_c), (0, 0)))
    g = _build_toeplitz(w_pad, stride, t_out, kw_pad).astype(compute_dtype)

    kernel = functools.partial(_fic_kernel, t_out=t_out, stride=stride,
                               n_tt=tt_per_chunk, kw_pad=kw_pad)

    out2d = pl.pallas_call(
        kernel,
        out_shape=jax.ShapeDtypeStruct((n_rows_pad, tt_per_chunk * lane),
                                       out_dtype),
        grid=(n_rows_pad // tile_n,),
        in_specs=[
            pl.BlockSpec((tile_n, w_in_pad), lambda i: (i, 0)),
            pl.BlockSpec((kw_pad, lane), lambda i: (0, 0)),
        ],
        out_specs=pl.BlockSpec((tile_n, tt_per_chunk * lane), lambda i: (i, 0)),
        compiler_params=pltpu.CompilerParams(
            dimension_semantics=("parallel",),
            vmem_limit_bytes=vmem_limit,
        ),
    )(xc, g)

    # ---- undo lane-dense layout (done in bf16 -> half traffic), drop padding ----
    out = out2d[:n_rows].reshape(n, n_chunks, tt_per_chunk, out_c_pad, t_out)
    out = out.transpose(0, 3, 1, 2, 4).reshape(
        n, out_c_pad, n_chunks * tt_per_chunk * t_out)
    return out[:, :out_c, :l_out].reshape(B, C, out_c, l_out)


def _fic_reference(x, weight, window_size, stride):
    """Pure-JAX f32 reference via lax.conv (matches nn.Conv1d, bias=False)."""
    B, C, L = x.shape
    x2d = x.reshape(B * C, 1, L).astype(jnp.float32)
    w = weight.astype(jnp.float32)[:, None, :]          # (out_c, 1, W)
    out = lax.conv_general_dilated(
        x2d, w, window_strides=(stride,), padding="VALID",
        dimension_numbers=("NCH", "OIH", "NCH"))
    return out.reshape(B, C, weight.shape[0], -1)


if __name__ == "__main__":
    key = jax.random.PRNGKey(0)

    def check(window_size, stride, B, C, L, k, **kw):
        x = jax.random.normal(k, (B, C, L), dtype=jnp.float32)
        weight = fic_init_weight(window_size)            # (2*(W//2), W)
        out = jax.block_until_ready(
            fic_forward(x, weight, window_size, stride, **kw))
        ref = _fic_reference(x, weight, window_size, stride)
        l_out = (L - window_size) // stride + 1
        assert out.shape == (B, C, 2 * (window_size // 2), l_out), out.shape
        out_f32 = out.astype(jnp.float32)
        err = float(jnp.max(jnp.abs(out_f32 - ref)))
        # bf16 in / bf16 out with f32 accumulation: relaxed tolerance vs f32 ref.
        assert jnp.allclose(out_f32, ref, atol=7e-2, rtol=7e-2), err

    k1, k2, k3 = jax.random.split(key, 3)
    # small case consistent with the module (B=2, C=4, L=64, W=8, S=4)
    check(8, 4, 2, 4, 64, k1)
    # odd window (out_c=6 -> channel-padded to 8), multi-time-tile path
    check(6, 2, 2, 3, 2048, k2)
    # force the wrapper-level time-chunking (long-L) path at a small size
    check(6, 2, 2, 3, 2048, k3, max_tiles_per_chunk=4)

    print("KERNEL_OK")
</pallas_src>

<mosaic_0001>
module attributes {stable_mosaic.version = 11 : i64} {
  func.func @_fic_kernel(%arg0: i32, %arg1: memref<16x256xbf16, #tpu.memory_space<vmem>>, %arg2: memref<256x256xbf16, #tpu.memory_space<vmem>>, %arg3: memref<16x256xbf16, #tpu.memory_space<vmem>>) attributes {dimension_semantics = [#tpu.dimension_semantics<parallel>], iteration_bounds = array<i64: 1>, scalar_prefetch = 0 : i64, scratch_operands = 0 : i64, tpu.core_type = #tpu.core_type<tc>, window_params = [{transform_indices = @transform_0, window_bounds = array<i64: 16, 256>}, {pipeline_mode = #tpu.pipeline_mode<synchronous>, transform_indices = @transform_1, window_bounds = array<i64: 256, 256>}, {transform_indices = @transform_2, window_bounds = array<i64: 16, 256>}]} {
    %c0 = arith.constant 0 : index
    %c0_0 = arith.constant 0 : index
    %0 = vector.load %arg2[%c0, %c0_0] : memref<256x256xbf16, #tpu.memory_space<vmem>>, vector<256x256xbf16>
    %c0_1 = arith.constant 0 : index
    %c0_2 = arith.constant 0 : index
    %1 = vector.load %arg1[%c0_1, %c0_2] : memref<16x256xbf16, #tpu.memory_space<vmem>>, vector<16x256xbf16>
    %cst = arith.constant dense<0.000000e+00> : vector<16x256xf32>
    %2 = tpu.matmul %1, %0, %cst {dimension_numbers = #tpu.dot_dimension_numbers<[1], [0], [0], [1], [0, 0, 1, 1], [], []>} : vector<16x256xbf16>, vector<256x256xbf16>, vector<16x256xf32> -> vector<16x256xf32>
    %3 = arith.truncf %2 : vector<16x256xf32> to vector<16x256xbf16>
    %c0_3 = arith.constant 0 : index
    %c0_4 = arith.constant 0 : index
    %4 = vector.load %arg3[%c0_3, %c0_4] : memref<16x256xbf16, #tpu.memory_space<vmem>>, vector<16x256xbf16>
    tpu.vector_store %arg3[%c0_3, %c0_4], %3 {strides = array<i32>} : memref<16x256xbf16, #tpu.memory_space<vmem>>, vector<16x256xbf16>,
    return
  }
  func.func @transform_0(%arg0: i32) -> (i32, i32) {
    %c0_i32 = arith.constant 0 : i32
    %c0_i32_0 = arith.constant 0 : i32
    return %arg0, %c0_i32 : i32, i32
  }
  func.func @transform_1(%arg0: i32) -> (i32, i32) {
    %c0_i32 = arith.constant 0 : i32
    %c0_i32_0 = arith.constant 0 : i32
    %c0_i32_1 = arith.constant 0 : i32
    return %c0_i32, %c0_i32_0 : i32, i32
  }
  func.func @transform_2(%arg0: i32) -> (i32, i32) {
    %c0_i32 = arith.constant 0 : i32
    %c0_i32_0 = arith.constant 0 : i32
    return %arg0, %c0_i32 : i32, i32
  }
}

</mosaic_0001>

<bundles_post_ra>
// kernel: tpu_custom_call.1
= control target key start
LH: loop header
LB: loop body
LE: loop exit
PB: predicated region body
PF: predicated region fallthrough
CT: control target
= control target key end

     0   :  { %7 = vsyncpa [#allocation3], 0  ;;  %s550_s0 = inlined_call_operand.hbm [shape: bf16[16,256], index: 0, kind: input, shape index: {}]   ;;  %s551_s1 = inlined_call_operand.hbm [shape: bf16[256,256], index: 1, kind: input, shape index: {}]   ;;  %s552_s2 = inlined_call_operand.hbm [shape: bf16[16,256], index: 2, kind: output, shape index: {}]  }
   0x1   :  { %8 = vsyncpa [#allocation6], 0 }
   0x2   :  { %9 = vsyncpa [#allocation4], 0  ;;  %s485_s9 = smov [#allocation2]   ;;  %s413_s13 = scalar_lea.hbm %s550_s0, 256 }
   0x3   :  { %s15_s10 = sshll.u32 %s485_s9, 4  ;;  %p414_p0 = scmp.ne.s32.totalorder %s550_s0, %s413_s13  ;;  %s16_s10 = int_to_ptr.vmem [resolvable:$true] %s15_s10 }
   0x4   :  { %p417_p1 = scmp.lt.u32.totalorder %s413_s13, %s550_s0 }
   0x6   :  { %p419_p2 = pnand %p417_p1, %p414_p0 }
   0x8   :  { %422 = shalt.err (!%p419_p2)
}
   0x9   :  { %s423_s18 = scalar_lea.vmem %s16_s10, 256  ;;  %p428_p4 = scmp.lt.s32.totalorder %s16_s10, %s16_s10 }
   0xa   :  { %p424_p3 = scmp.ne.s32.totalorder %s16_s10, %s423_s18  ;;  %p429_p5 = scmp.lt.s32.totalorder %s423_s18, %s423_s18 }
   0xc   :  { %p430_p6 = por %p429_p5, %p428_p4 }
   0xe   :  { %p431_p7 = pnand %p430_p6, %p424_p3 }
  0x10   :  { %434 = shalt.err (!%p431_p7)
}
  0x11   :  { %s486_s19 = smov 128   ;;  %s487_s20 = smov 8  }
  0x12   :  { %21 = dma.hbm_to_vmem [thread:$0]  %s550_s0, 256, %s16_s10, [#allocation3], %s486_s19, %s486_s19, %s487_s20  }
  0x13   :  { %s488_s23 = smov [#allocation5]   ;;  %s435_s27 = scalar_lea.hbm %s551_s1, 4096 }
  0x14   :  { %s27_s24 = sshll.u32 %s488_s23, 4  ;;  %p436_p8 = scmp.ne.s32.totalorder %s551_s1, %s435_s27  ;;  %s28_s24 = int_to_ptr.vmem [resolvable:$true] %s27_s24 }
  0x15   :  { %p439_p9 = scmp.lt.u32.totalorder %s435_s27, %s551_s1 }
  0x17   :  { %p441_p10 = pnand %p439_p9, %p436_p8 }
  0x19   :  { %444 = shalt.err (!%p441_p10)
}
  0x1a   :  { %s445_s4 = scalar_lea.vmem %s28_s24, 4096  ;;  %p450_p12 = scmp.lt.s32.totalorder %s28_s24, %s28_s24 }
  0x1b   :  { %p446_p11 = scmp.ne.s32.totalorder %s28_s24, %s445_s4  ;;  %p451_p13 = scmp.lt.s32.totalorder %s445_s4, %s445_s4 }
  0x1d   :  { %p452_p0 = por %p451_p13, %p450_p12 }
  0x1f   :  { %p453_p1 = pnand %p452_p0, %p446_p11 }
  0x21   :  { %456 = shalt.err (!%p453_p1)
}
  0x22   :  { %33 = dma.hbm_to_vmem [thread:$0]  %s551_s1, 4096, %s28_s24, [#allocation6], %s486_s19, %s486_s19, %s487_s20  }
  0x23   :  { %479 = dma.done.wait [#allocation3], 256  }
  0x24   :  { %480 = vsyncadd [#allocation3], 4294967040 }
  0x25   :  { %481 = dma.done.wait [#allocation6], 4096  }
  0x26   :  { %482 = vsyncadd [#allocation6], 4294963200  ;;  %v362_v0 = vld [vmem:[#allocation5 + $0x4] ss:$8 sps:$4 sm:$0xff]   ;;  %v364_v1 = vld [vmem:[#allocation5] ss:$8 sps:$4 sm:$0xff]  }
  0x27   :  { %244 = vmatprep.subr.bf16.mxu0 %v362_v0  ;;  %v365_v2 = vld [vmem:[#allocation5 + $0x14] ss:$8 sps:$4 sm:$0xff]   ;;  %v367_v3 = vld [vmem:[#allocation5 + $0x10] ss:$8 sps:$4 sm:$0xff]   ;;  %v368_v4 = vld [vmem:[#allocation5 + $0x24] ss:$8 sps:$4 sm:$0xff]  }
  0x28   :  { %245 = vmatpush1.bf16.msra.mxu0 %v364_v1  ;;  %v370_v5 = vld [vmem:[#allocation5 + $0x20] ss:$8 sps:$4 sm:$0xff]   ;;  %v371_v6 = vld [vmem:[#allocation5 + $0x34] ss:$8 sps:$4 sm:$0xff]   ;;  %v373_v7 = vld [vmem:[#allocation5 + $0x30] ss:$8 sps:$4 sm:$0xff]  }
  0x29   :  { %246 = vmatprep.subr.bf16.mxu0 %v365_v2  ;;  %v374_v8 = vld [vmem:[#allocation5 + $0x44] ss:$8 sps:$4 sm:$0xff]   ;;  %v376_v9 = vld [vmem:[#allocation5 + $0x40] ss:$8 sps:$4 sm:$0xff]   ;;  %v377_v10 = vld [vmem:[#allocation5 + $0x54] ss:$8 sps:$4 sm:$0xff]  }
  0x2a   :  { %v379_v11 = vld [vmem:[#allocation5 + $0x50] ss:$8 sps:$4 sm:$0xff]   ;;  %v380_v12 = vld [vmem:[#allocation5 + $0x64] ss:$8 sps:$4 sm:$0xff]   ;;  %v412_v13 = vld [vmem:[#allocation2 + $0x4] ss:$8 sps:$4 sm:$0xff]  }
  0x2b   :  { %v382_v14 = vld [vmem:[#allocation5 + $0x60] ss:$8 sps:$4 sm:$0xff]   ;;  %v383_v15 = vld [vmem:[#allocation5 + $0x74] ss:$8 sps:$4 sm:$0xff]   ;;  %276 = vmatprep.mubr.bf16.mxu0 %v412_v13  ;;  %v385_v16 = vld [vmem:[#allocation5 + $0x70] ss:$8 sps:$4 sm:$0xff]  }
  0x2c   :  { %247 = vmatpush1.bf16.msra.mxu0 %v367_v3  ;;  %v386_v17 = vld [vmem:[#allocation5 + $0x84] ss:$8 sps:$4 sm:$0xff]   ;;  %v388_v18 = vld [vmem:[#allocation5 + $0x80] ss:$8 sps:$4 sm:$0xff]   ;;  %v389_v19 = vld [vmem:[#allocation5 + $0x94] ss:$8 sps:$4 sm:$0xff]  }
  0x2d   :  { %248 = vmatprep.subr.bf16.mxu0 %v368_v4  ;;  %v391_v20 = vld [vmem:[#allocation5 + $0x90] ss:$8 sps:$4 sm:$0xff]   ;;  %v392_v21 = vld [vmem:[#allocation5 + $0xa4] ss:$8 sps:$4 sm:$0xff]   ;;  %v394_v22 = vld [vmem:[#allocation5 + $0xa0] ss:$8 sps:$4 sm:$0xff]  }
  0x2e   :  { %v395_v23 = vld [vmem:[#allocation5 + $0xb4] ss:$8 sps:$4 sm:$0xff]   ;;  %v397_v24 = vld [vmem:[#allocation5 + $0xb0] ss:$8 sps:$4 sm:$0xff]   ;;  %v398_v25 = vld [vmem:[#allocation5 + $0xc4] ss:$8 sps:$4 sm:$0xff]  }
  0x2f   :  { %v400_v26 = vld [vmem:[#allocation5 + $0xc0] ss:$8 sps:$4 sm:$0xff]   ;;  %v401_v27 = vld [vmem:[#allocation5 + $0xd4] ss:$8 sps:$4 sm:$0xff]   ;;  %v403_v28 = vld [vmem:[#allocation5 + $0xd0] ss:$8 sps:$4 sm:$0xff]  }
  0x30   :  { %249 = vmatpush1.bf16.msra.mxu0 %v370_v5  ;;  %v404_v29 = vld [vmem:[#allocation5 + $0xe4] ss:$8 sps:$4 sm:$0xff]   ;;  %v406_v30 = vld [vmem:[#allocation5 + $0xe0] ss:$8 sps:$4 sm:$0xff]   ;;  %v407_v31 = vld [vmem:[#allocation5 + $0xf4] ss:$8 sps:$4 sm:$0xff]  }
  0x31   :  { %250 = vmatprep.subr.bf16.mxu0 %v371_v6  ;;  %v409_v32 = vld [vmem:[#allocation5 + $0xf0] ss:$8 sps:$4 sm:$0xff]   ;;  %s489_s1 = smov [#allocation7]  }
  0x32   :  { %v410_v33 = vld [vmem:[#allocation2] ss:$8 sps:$4 sm:$0xff]   ;;  %s306_s6 = sshll.u32 %s489_s1, 4  ;;  %s307_s6 = int_to_ptr.vmem [resolvable:$true] %s306_s6 }
  0x33   :  { %s457_s7 = scalar_lea.vmem %s307_s6, 256  ;;  %p462_p3 = scmp.lt.s32.totalorder %s307_s6, %s307_s6 }
  0x34   :  { %251 = vmatpush1.bf16.msra.mxu0 %v373_v7  ;;  %p458_p2 = scmp.ne.s32.totalorder %s307_s6, %s457_s7  ;;  %p463_p4 = scmp.lt.s32.totalorder %s457_s7, %s457_s7 }
  0x35   :  { %252 = vmatprep.subr.bf16.mxu0 %v374_v8 }
  0x36   :  { %p464_p5 = por %p463_p4, %p462_p3 }
  0x38   :  { %253 = vmatpush1.bf16.msra.mxu0 %v376_v9  ;;  %p465_p6 = pnand %p464_p5, %p458_p2 }
  0x39   :  { %254 = vmatprep.subr.bf16.mxu0 %v377_v10 }
  0x3c   :  { %255 = vmatpush1.bf16.msra.mxu0 %v379_v11 }
  0x3d   :  { %256 = vmatprep.subr.bf16.mxu0 %v380_v12 }
  0x40   :  { %257 = vmatpush1.bf16.msra.mxu0 %v382_v14 }
  0x41   :  { %258 = vmatprep.subr.bf16.mxu0 %v383_v15 }
  0x44   :  { %259 = vmatpush1.bf16.msra.mxu0 %v385_v16 }
  0x45   :  { %260 = vmatprep.subr.bf16.mxu0 %v386_v17 }
  0x48   :  { %261 = vmatpush1.bf16.msra.mxu0 %v388_v18 }
  0x49   :  { %262 = vmatprep.subr.bf16.mxu0 %v389_v19 }
  0x4c   :  { %263 = vmatpush1.bf16.msra.mxu0 %v391_v20 }
  0x4d   :  { %264 = vmatprep.subr.bf16.mxu0 %v392_v21 }
  0x50   :  { %265 = vmatpush1.bf16.msra.mxu0 %v394_v22 }
  0x51   :  { %266 = vmatprep.subr.bf16.mxu0 %v395_v23 }
  0x54   :  { %267 = vmatpush1.bf16.msra.mxu0 %v397_v24 }
  0x55   :  { %268 = vmatprep.subr.bf16.mxu0 %v398_v25 }
  0x58   :  { %269 = vmatpush1.bf16.msra.mxu0 %v400_v26 }
  0x59   :  { %270 = vmatprep.subr.bf16.mxu0 %v401_v27 }
  0x5c   :  { %271 = vmatpush1.bf16.msra.mxu0 %v403_v28 }
  0x5d   :  { %272 = vmatprep.subr.bf16.mxu0 %v404_v29 }
  0x60   :  { %273 = vmatpush1.bf16.msra.mxu0 %v406_v30 }
  0x61   :  { %274 = vmatprep.subr.bf16.mxu0 %v407_v31 }
  0x64   :  { %275 = vmatpush1.bf16.msra.mxu0 %v409_v32 }
  0x67   :  { %277 = vmatmul.mubr.bf16.vlgmr.msra.gmra.mrb[0].mxu0 %v410_v33 }
 0x13a   :  { %v278_v34 = vpop.f32.mrb[0].mxu0 }
 0x13b   :  { %v280_v35 = vpop.f32.mrb[1].mxu0 }
 0x13c   :  { %v355_v36 = vpack.c.bf16 %v280_v35, %v278_v34  ;;  %v282_v37 = vpop.f32.mrb[2].mxu0 }
 0x13d   :  { %v284_v38 = vpop.f32.mrb[3].mxu0 }
 0x13e   :  { %299 = vst [vmem:[#allocation7] sm:$0xff] %v355_v36  ;;  %v356_v39 = vpack.c.bf16 %v284_v38, %v282_v37 }
 0x140   :  { %300 = vst [vmem:[#allocation7 + $0x8] sm:$0xff] %v356_v39 }
 0x141   :  { %468 = shalt.err (!%p465_p6)
}
 0x142   :  { %s469_s10 = scalar_lea.hbm %s552_s2, 256 }
 0x143   :  { %p470_p7 = scmp.ne.s32.totalorder %s552_s2, %s469_s10  ;;  %p473_p8 = scmp.lt.u32.totalorder %s469_s10, %s552_s2 }
 0x145   :  { %p475_p9 = pnand %p473_p8, %p470_p7 }
 0x147   :  { %478 = shalt.err (!%p475_p9)
}
 0x148   :  { %312 = dma.vmem_to_hbm [thread:$0]  %s307_s6, 256, %s552_s2, [#allocation4], %s486_s19, %s486_s19, %s487_s20  }
 0x149   :  { %483 = dma.done.wait [#allocation4], 256  }
 0x14a   :  { %484 = vsyncadd [#allocation4], 4294967040 }
 0x14b   :  { %316 = vsyncpa [#allocation3], 1 }
 0x14c   :  { %317 = vsyncpa [#allocation6], 1 }
 0x14d   :  { %318 = vsyncpa [#allocation4], 1 }

</bundles_post_ra>
